<compile_context>
chip_gen: v7x
topology: tpu7x:2x2x1
jax: 0.10.0
libtpu: 0.0.40
codegen_flags: <defaults>
</compile_context>

<pallas_src>
import functools

import jax
import jax.numpy as jnp
from jax.experimental import pallas as pl
from jax.experimental.pallas import tpu as pltpu

IN_DIM = 67
HID = 64


def _round_up(n: int, m: int) -> int:
    return ((n + m - 1) // m) * m


def ann_kernel(x_ref, w1_ref, b1_ref, w2_ref, b2_ref, w3_ref, b3_ref, o_ref):
    # In-kernel bf16 cast of the activation tile (rides spare VALU slots; the
    # dominant x HBM stream is read exactly once by the pipeline DMA).
    x = x_ref[...].astype(jnp.bfloat16)
    # fc1 + relu  (MXU: bf16 inputs, f32 accumulation)
    h1 = jnp.dot(x, w1_ref[...], preferred_element_type=jnp.float32)
    h1 = jnp.maximum(h1 + b1_ref[...], 0.0)
    # fc2 + relu  (MXU: bf16 inputs, f32 accumulation)
    h2 = jnp.dot(h1.astype(jnp.bfloat16), w2_ref[...],
                 preferred_element_type=jnp.float32)
    h2 = jnp.maximum(h2 + b2_ref[...], 0.0)
    # fc3 (out_features == 1): VPU multiply + XLU lane reduction instead of an
    # MXU pass that would produce a single useful column.
    out = jnp.sum(h2 * w3_ref[...], axis=-1, keepdims=True) + b3_ref[0, 0]
    o_ref[...] = out.astype(o_ref.dtype)


@functools.partial(jax.jit, static_argnames=("tile_b",))
def ann_forward(x, params, *, tile_b: int = 4096):
    """x: (B, 67) float32.  params: dict with w1,b1,w2,b2,w3_row,b3.

    Returns (B, 1) float32, matching torch's fc3(relu(fc2(relu(fc1(x))))).
    """
    B = x.shape[0]

    # Tile selection:
    #   * at least 2 tiles whenever B allows it (feeds both v7x TensorCores),
    #   * capped at tile_b=4096 so double-buffered x tiles + the 128x
    #     lane-padded (tb,1) output buffers + h1/h2 stay well under the 32 MiB
    #     scoped VMEM limit on every generation,
    #   * multiple of 8 to satisfy the (8,128) sublane constraint.
    tb = max(8, min(tile_b, _round_up(pl.cdiv(B, 2), 8)))
    grid = (pl.cdiv(B, tb),)   # ragged last block handled by Pallas masking

    # Tiny weights: cast once in the wrapper (negligible), keep VMEM-resident
    # across grid steps via constant index_maps.
    w1 = params["w1"].astype(jnp.bfloat16)          # (67, 64)
    w2 = params["w2"].astype(jnp.bfloat16)          # (64, 64)
    b1 = params["b1"]                               # (1, 64) f32
    b2 = params["b2"]                               # (1, 64) f32
    w3 = params["w3_row"]                           # (1, 64) f32 (VPU path)
    b3 = params["b3"]                               # (1, 1)  f32 (SMEM)

    resident = lambda shape: pl.BlockSpec(shape, lambda i: (0, 0))
    param_bytes = sum(int(p.size) * p.dtype.itemsize
                      for p in (w1, b1, w2, b2, w3, b3))
    cost = pl.CostEstimate(
        flops=2 * B * (IN_DIM * HID + HID * HID + HID),
        transcendentals=0,
        bytes_accessed=int(x.size) * 4 + B * 4 + param_bytes,
    )

    out = pl.pallas_call(
        ann_kernel,
        out_shape=jax.ShapeDtypeStruct((B, 1), jnp.float32),
        grid=grid,
        in_specs=[
            pl.BlockSpec((tb, IN_DIM), lambda i: (i, 0)),   # x tile (pipelined, f32)
            resident((IN_DIM, HID)),                        # w1
            resident((1, HID)),                             # b1
            resident((HID, HID)),                           # w2
            resident((1, HID)),                             # b2
            resident((1, HID)),                             # w3 (row form)
            pl.BlockSpec(memory_space=pltpu.MemorySpace.SMEM),  # b3 scalar
        ],
        out_specs=pl.BlockSpec((tb, 1), lambda i: (i, 0)),
        compiler_params=pltpu.CompilerParams(
            dimension_semantics=("parallel",),   # shard batch tiles on v7x TCs
            vmem_limit_bytes=32 << 20,           # fits v5e/v6e/v7x comfortably
        ),
        cost_estimate=cost,
    )(x, w1, b1, w2, b2, w3, b3)

    return out


def init_params(key):
    """Deterministic init mimicking torch.nn.Linear defaults (U(+-1/sqrt(fan_in)))."""
    dims = [(IN_DIM, HID), (HID, HID), (HID, 1)]
    params = {}
    for i, (fan_in, fan_out) in enumerate(dims, start=1):
        key, kw, kb = jax.random.split(key, 3)
        bound = 1.0 / jnp.sqrt(fan_in)
        w = jax.random.uniform(kw, (fan_in, fan_out), jnp.float32, -bound, bound)
        b = jax.random.uniform(kb, (1, fan_out), jnp.float32, -bound, bound)
        if i < 3:
            params[f"w{i}"] = w           # (in, out) -> kernel does x @ W
            params[f"b{i}"] = b
        else:
            params["w3_row"] = w.T        # (1, 64) row for the VPU fc3 path
            params["b3"] = b              # (1, 1)
    return params


def ann_reference(x, params):
    """Pure-JAX reference mirroring the kernel's bf16 matmul inputs / f32 acc."""
    bf = jnp.bfloat16
    h = jnp.dot(x.astype(bf), params["w1"].astype(bf),
                preferred_element_type=jnp.float32) + params["b1"]
    h = jnp.maximum(h, 0.0)
    h = jnp.dot(h.astype(bf), params["w2"].astype(bf),
                preferred_element_type=jnp.float32) + params["b2"]
    h = jnp.maximum(h, 0.0)
    return jnp.dot(h, params["w3_row"].T) + params["b3"]


if __name__ == "__main__":
    key = jax.random.PRNGKey(0)
    kx, kp = jax.random.split(key)
    params = init_params(kp)

    # Small batch (single tile) and a ragged batch (multi-tile grid, B not a
    # multiple of the tile -> exercises the masked last block).
    for B in (8, 532):
        kx, sub = jax.random.split(kx)
        x = jax.random.normal(sub, (B, IN_DIM), jnp.float32)

        out = jax.block_until_ready(ann_forward(x, params))
        ref = ann_reference(x, params)

        assert out.shape == (B, 1), out.shape
        assert jnp.allclose(out, ref, atol=1e-3, rtol=1e-3), (
            float(jnp.max(jnp.abs(out - ref))))

    print("KERNEL_OK")
</pallas_src>

<mosaic_0001>
module attributes {stable_mosaic.version = 11 : i64} {
  func.func @ann_kernel(%arg0: i32, %arg1: memref<8x67xf32, #tpu.memory_space<vmem>>, %arg2: memref<67x64xbf16, #tpu.memory_space<vmem>>, %arg3: memref<1x64xf32, #tpu.memory_space<vmem>>, %arg4: memref<64x64xbf16, #tpu.memory_space<vmem>>, %arg5: memref<1x64xf32, #tpu.memory_space<vmem>>, %arg6: memref<1x64xf32, #tpu.memory_space<vmem>>, %arg7: memref<1x1xf32, #tpu.memory_space<smem>>, %arg8: memref<8x1xf32, #tpu.memory_space<vmem>>) attributes {dimension_semantics = [#tpu.dimension_semantics<parallel>], iteration_bounds = array<i64: 1>, scalar_prefetch = 0 : i64, scratch_operands = 0 : i64, tpu.core_type = #tpu.core_type<tc>, window_params = [{transform_indices = @transform_0, window_bounds = array<i64: 8, 67>}, {pipeline_mode = #tpu.pipeline_mode<synchronous>, transform_indices = @transform_1, window_bounds = array<i64: 67, 64>}, {pipeline_mode = #tpu.pipeline_mode<synchronous>, transform_indices = @transform_2, window_bounds = array<i64: 1, 64>}, {pipeline_mode = #tpu.pipeline_mode<synchronous>, transform_indices = @transform_3, window_bounds = array<i64: 64, 64>}, {pipeline_mode = #tpu.pipeline_mode<synchronous>, transform_indices = @transform_4, window_bounds = array<i64: 1, 64>}, {pipeline_mode = #tpu.pipeline_mode<synchronous>, transform_indices = @transform_5, window_bounds = array<i64: 1, 64>}, {transform_indices = @transform_6, window_bounds = array<i64: 1, 1>}, {transform_indices = @transform_7, window_bounds = array<i64: 8, 1>}]} {
    %c0 = arith.constant 0 : index
    %c0_0 = arith.constant 0 : index
    %0 = vector.load %arg1[%c0, %c0_0] : memref<8x67xf32, #tpu.memory_space<vmem>>, vector<8x67xf32>
    %1 = arith.truncf %0 : vector<8x67xf32> to vector<8x67xbf16>
    %c0_1 = arith.constant 0 : index
    %c0_2 = arith.constant 0 : index
    %2 = vector.load %arg2[%c0_1, %c0_2] : memref<67x64xbf16, #tpu.memory_space<vmem>>, vector<67x64xbf16>
    %cst = arith.constant dense<0.000000e+00> : vector<8x64xf32>
    %3 = tpu.matmul %1, %2, %cst {dimension_numbers = #tpu.dot_dimension_numbers<[1], [0], [0], [1], [0, 0, 1, 1], [], []>} : vector<8x67xbf16>, vector<67x64xbf16>, vector<8x64xf32> -> vector<8x64xf32>
    %c0_3 = arith.constant 0 : index
    %c0_4 = arith.constant 0 : index
    %4 = vector.load %arg3[%c0_3, %c0_4] : memref<1x64xf32, #tpu.memory_space<vmem>>, vector<1x64xf32>
    %5 = vector.broadcast %4 : vector<1x64xf32> to vector<8x64xf32>
    %6 = arith.addf %3, %5 : vector<8x64xf32>
    %cst_5 = arith.constant 0.000000e+00 : f32
    %7 = vector.broadcast %cst_5 : f32 to vector<8x64xf32>
    %8 = arith.maximumf %6, %7 : vector<8x64xf32>
    %9 = arith.truncf %8 : vector<8x64xf32> to vector<8x64xbf16>
    %c0_6 = arith.constant 0 : index
    %c0_7 = arith.constant 0 : index
    %10 = vector.load %arg4[%c0_6, %c0_7] : memref<64x64xbf16, #tpu.memory_space<vmem>>, vector<64x64xbf16>
    %cst_8 = arith.constant dense<0.000000e+00> : vector<8x64xf32>
    %11 = tpu.matmul %9, %10, %cst_8 {dimension_numbers = #tpu.dot_dimension_numbers<[1], [0], [0], [1], [0, 0, 1, 1], [], []>} : vector<8x64xbf16>, vector<64x64xbf16>, vector<8x64xf32> -> vector<8x64xf32>
    %c0_9 = arith.constant 0 : index
    %c0_10 = arith.constant 0 : index
    %12 = vector.load %arg5[%c0_9, %c0_10] : memref<1x64xf32, #tpu.memory_space<vmem>>, vector<1x64xf32>
    %13 = vector.broadcast %12 : vector<1x64xf32> to vector<8x64xf32>
    %14 = arith.addf %11, %13 : vector<8x64xf32>
    %cst_11 = arith.constant 0.000000e+00 : f32
    %15 = vector.broadcast %cst_11 : f32 to vector<8x64xf32>
    %16 = arith.maximumf %14, %15 : vector<8x64xf32>
    %c0_12 = arith.constant 0 : index
    %c0_13 = arith.constant 0 : index
    %17 = vector.load %arg6[%c0_12, %c0_13] : memref<1x64xf32, #tpu.memory_space<vmem>>, vector<1x64xf32>
    %18 = vector.broadcast %17 : vector<1x64xf32> to vector<8x64xf32>
    %19 = arith.mulf %16, %18 : vector<8x64xf32>
    %cst_14 = arith.constant dense<0.000000e+00> : vector<8xf32>
    %20 = vector.multi_reduction <add>, %19, %cst_14 [1] : vector<8x64xf32> to vector<8xf32>
    %21 = vector.shape_cast %20 : vector<8xf32> to vector<8x1xf32>
    %c0_15 = arith.constant 0 : index
    %c0_16 = arith.constant 0 : index
    %22 = memref.load %arg7[%c0_15, %c0_16] : memref<1x1xf32, #tpu.memory_space<smem>>
    %23 = vector.broadcast %22 : f32 to vector<8x1xf32>
    %24 = arith.addf %21, %23 : vector<8x1xf32>
    %c0_17 = arith.constant 0 : index
    %c0_18 = arith.constant 0 : index
    %25 = vector.load %arg8[%c0_17, %c0_18] : memref<8x1xf32, #tpu.memory_space<vmem>>, vector<8x1xf32>
    tpu.vector_store %arg8[%c0_17, %c0_18], %24 {strides = array<i32>} : memref<8x1xf32, #tpu.memory_space<vmem>>, vector<8x1xf32>,
    return
  }
  func.func @transform_0(%arg0: i32) -> (i32, i32) {
    %c0_i32 = arith.constant 0 : i32
    %c0_i32_0 = arith.constant 0 : i32
    return %arg0, %c0_i32 : i32, i32
  }
  func.func @transform_1(%arg0: i32) -> (i32, i32) {
    %c0_i32 = arith.constant 0 : i32
    %c0_i32_0 = arith.constant 0 : i32
    %c0_i32_1 = arith.constant 0 : i32
    return %c0_i32, %c0_i32_0 : i32, i32
  }
  func.func @transform_2(%arg0: i32) -> (i32, i32) {
    %c0_i32 = arith.constant 0 : i32
    %c0_i32_0 = arith.constant 0 : i32
    %c0_i32_1 = arith.constant 0 : i32
    return %c0_i32, %c0_i32_0 : i32, i32
  }
  func.func @transform_3(%arg0: i32) -> (i32, i32) {
    %c0_i32 = arith.constant 0 : i32
    %c0_i32_0 = arith.constant 0 : i32
    %c0_i32_1 = arith.constant 0 : i32
    return %c0_i32, %c0_i32_0 : i32, i32
  }
  func.func @transform_4(%arg0: i32) -> (i32, i32) {
    %c0_i32 = arith.constant 0 : i32
    %c0_i32_0 = arith.constant 0 : i32
    %c0_i32_1 = arith.constant 0 : i32
    return %c0_i32, %c0_i32_0 : i32, i32
  }
  func.func @transform_5(%arg0: i32) -> (i32, i32) {
    %c0_i32 = arith.constant 0 : i32
    %c0_i32_0 = arith.constant 0 : i32
    %c0_i32_1 = arith.constant 0 : i32
    return %c0_i32, %c0_i32_0 : i32, i32
  }
  func.func @transform_6(%arg0: i32) -> (i32, i32) {
    %c0_i32 = arith.constant 0 : i32
    %c0_i32_0 = arith.constant 0 : i32
    %c0_i32_1 = arith.constant 0 : i32
    return %c0_i32, %c0_i32_0 : i32, i32
  }
  func.func @transform_7(%arg0: i32) -> (i32, i32) {
    %c0_i32 = arith.constant 0 : i32
    %c0_i32_0 = arith.constant 0 : i32
    return %arg0, %c0_i32 : i32, i32
  }
}

</mosaic_0001>

<bundles_post_ra>
// kernel: ann_forward.1
= control target key start
LH: loop header
LB: loop body
LE: loop exit
PB: predicated region body
PF: predicated region fallthrough
CT: control target
= control target key end

     0   :  { %v293_v0 = vmov 0.0   ;;  %vm294_vm0 = vmmov 0   ;;  %vm77_vm1 = vcmask 1040384   ;;  %vm78_vm2 = vcmask 1041408   ;;  %s381_s1 = inlined_call_operand.vmem [shape: bf16[67,64], index: 1, kind: input, shape index: {}]   ;;  %s382_s3 = inlined_call_operand.vmem [shape: bf16[64,64], index: 3, kind: input, shape index: {}]   ;;  %s383_s0 = inlined_call_operand.vmem [shape: f32[8,67], index: 0, kind: input, shape index: {}]   ;;  %s384_s2 = inlined_call_operand.vmem [shape: f32[1,64], index: 2, kind: input, shape index: {}]   ;;  %s385_s4 = inlined_call_operand.vmem [shape: f32[1,64], index: 4, kind: input, shape index: {}]   ;;  %s386_s5 = inlined_call_operand.vmem [shape: f32[1,64], index: 5, kind: input, shape index: {}]   ;;  %s387_s6 = inlined_call_operand.<no memory space> [shape: f32[1,1], index: 6, kind: input, shape index: {}]   ;;  %s388_s7 = inlined_call_operand.vmem [shape: f32[8,1], index: 7, kind: output, shape index: {}]  }
   0x1   :  { %255 = vmatprep.subr.bf16.mxu0 %v293_v0  ;;  %v284_v1 = vld [vmem:[%s381_s1] sm:$0xff]   ;;  %269 = vmatprep.subr.bf16.mxu1 %v293_v0  ;;  %v285_v2 = vld [vmem:[%s381_s1 + $0x8] sm:$0xff]   ;;  %v286_v4 = vld [vmem:[%s381_s1 + $0x10] sm:$0xff]   ;;  %v295_v6 = vmov 65535   ;;  %vm73_vm3 = vcmask 547840   ;;  %vm165_vm4 = vcmask 523264   ;;  %v222_v34 = vstv %s387_s6 }
   0x2   :  { %256 = vmatpush3.bf16.msra.mxu0 %v284_v1  ;;  %265 = vmatprep.mubr.msk.bf16.mxu0 %vm294_vm0, %v293_v0  ;;  %v289_v3 = vld [vmem:[%s382_s3] sm:$0xff]   ;;  %v290_v5 = vld [vmem:[%s382_s3 + $0x8] sm:$0xff]   ;;  %v79_v7 = vsel %vm77_vm1, 4294967295, %v295_v6  ;;  %v287_v8 = vld [vmem:[%s381_s1 + $0x18] sm:$0xff]   ;;  %vm224_vm5 = vcmask 7168  }
   0x3   :  { %257 = vmatprep.subr.bf16.mxu0 %v293_v0  ;;  %277 = vmatprep.mubr.msk.bf16.mxu1 %vm294_vm0, %v293_v0  ;;  %v288_v9 = vld [vmem:[%s381_s1 + $0x20] ss:$0 sps:$4 sm:$0x33]   ;;  %v80_v10 = vsel %vm78_vm2, %v79_v7, 0  ;;  %v291_v14 = vld [vmem:[%s382_s3 + $0x10] sm:$0xff]   ;;  %v292_v15 = vld [vmem:[%s382_s3 + $0x18] sm:$0xff]  }
   0x4   :  { %270 = vmatpush3.bf16.msra.mxu1 %v289_v3  ;;  %v82_v11 = vand.u32 %v288_v9, %v80_v10  ;;  %v28_v12 = vld [vmem:[%s383_s0] sm:$0xff] }
   0x5   :  { %271 = vmatprep.subr.bf16.mxu1 %v293_v0  ;;  %v29_v13 = vpack.c.bf16 %v28_v12, %v28_v12  ;;  %v230_v16 = vld [vmem:[%s384_s2] ss:$0 sm:$0xff] }
   0x6   :  { %258 = vmatpush3.bf16.msra.mxu0 %v285_v2  ;;  %v237_v24 = vld [vmem:[%s385_s4] ss:$0 sm:$0xff] }
   0x7   :  { %259 = vmatprep.subr.bf16.mxu0 %v293_v0  ;;  %v243_v29 = vld [vmem:[%s386_s5] ss:$0 sm:$0xff] }
   0x8   :  { %272 = vmatpush3.bf16.msra.mxu1 %v290_v5 }
   0x9   :  { %273 = vmatprep.subr.bf16.mxu1 %v293_v0 }
   0xa   :  { %260 = vmatpush3.bf16.msra.mxu0 %v286_v4 }
   0xb   :  { %261 = vmatprep.subr.bf16.mxu0 %v293_v0 }
   0xc   :  { %274 = vmatpush3.bf16.msra.mxu1 %v291_v14 }
   0xd   :  { %275 = vmatprep.subr.bf16.mxu1 %v293_v0 }
   0xe   :  { %262 = vmatpush3.bf16.msra.mxu0 %v287_v8 }
   0xf   :  { %263 = vmatprep.subr.bf16.mxu0 %v293_v0 }
  0x10   :  { %276 = vmatpush3.bf16.msra.mxu1 %v292_v15 }
  0x12   :  { %264 = vmatpush3.bf16.msra.mxu0 %v82_v11 }
  0x15   :  { %266 = vmatmul.mubr.msk.bf16.vlgmr.msra.gmra.mrb[0].mxu0 %vm73_vm3, %v29_v13 }
  0xe8   :  { %v118_v17 = vpop.f32.mrb[0].mxu0 }
  0xe9   :  { %v119_v18 = vadd.f32 %v230_v16, %v118_v17  ;;  %v267_v19 = vpop.f32.mrb[1].mxu0 }
  0xea   :  { %v121_v20 = vpop.f32.mrb[2].mxu0 }
  0xeb   :  { %v124_v21 = vmax.f32 %v119_v18, 0.0  ;;  %v268_v22 = vpop.f32.mrb[3].mxu0 }
  0xed   :  { %v125_v23 = vpack.c.bf16 %v124_v21, %v124_v21 }
  0xef   :  { %278 = vmatmul.mubr.msk.bf16.vlgmr.msra.gmra.mrb[0].mxu1 %vm165_vm4, %v125_v23 }
 0x1c2   :  { %v203_v25 = vpop.f32.mrb[0].mxu1 }
 0x1c3   :  { %v204_v26 = vadd.f32 %v237_v24, %v203_v25  ;;  %v279_v27 = vpop.f32.mrb[1].mxu1 }
 0x1c4   :  { %v206_v28 = vpop.f32.mrb[2].mxu1 }
 0x1c5   :  { %v209_v30 = vmax.f32 %v204_v26, 0.0  ;;  %v280_v31 = vpop.f32.mrb[3].mxu1 }
 0x1c7   :  { %v217_v32 = vmul.f32 %v243_v29, %v209_v30 }
 0x1c9   :  { %v218_v33 = vsel %vm165_vm4, %v217_v32, 0.0 }
 0x1ca   :  { %219 = vadd.xlane.f32.xlu0 %v218_v33 }
 0x257   :  { %v220_v35 = vpop.xlane.xlu0 %219 }
 0x258   :  { %v223_v36 = vadd.f32 %v222_v34, %v220_v35 }
 0x25a   :  { %225 = vst.msk [vmem:[%s388_s7] sm:$0xff] %vm224_vm5, %v223_v36 }

</bundles_post_ra>
